<compile_context>
chip_gen: v7x
topology: tpu7x:2x2x1
jax: 0.10.0
libtpu: 0.0.40
codegen_flags: <defaults>
</compile_context>

<pallas_src>
import jax
import jax.numpy as jnp
from jax.experimental import pallas as pl
from jax.experimental.pallas import tpu as pltpu


def _affine_kernel(x_ref, o_ref):
    # ((x + 2) - 1) * 3 / 2 folded to a 2-op affine form (2 VALU ops, no div).
    x = x_ref[...]
    o_ref[...] = x * 1.5 + 1.5


def pt_module_forward(x):
    """Applies ((x + 2) - 1) * 3 / 2 elementwise via a Pallas TPU kernel."""
    orig_shape = x.shape
    dtype = x.dtype
    n = int(x.size)
    flat = x.reshape(-1)

    LANE = 128
    if n <= (1 << 16):
        # Small-input fast path: a single full-array block of width 128,
        # padded to an (8, 128)-aligned tile. One grid step, no pipelining cost.
        lanes = LANE
        tile_elems = 8 * LANE
        padded_n = ((n + tile_elems - 1) // tile_elems) * tile_elems
        rows = padded_n // lanes
        block_rows = rows
    else:
        # Lane-dense streaming path: 512-wide lanes, ~2 MiB f32 tiles
        # (1024 rows x 512 lanes x 4 B). Clamp block_rows for medium inputs so
        # padding stays small.
        lanes = 512
        rows_needed = -(-n // lanes)
        block_rows = min(1024, ((rows_needed + 7) // 8) * 8)
        tile_elems = block_rows * lanes
        padded_n = ((n + tile_elems - 1) // tile_elems) * tile_elems
        rows = padded_n // lanes

    if padded_n != n:
        flat = jnp.pad(flat, (0, padded_n - n))

    x2 = flat.reshape(rows, lanes)
    grid = (rows // block_rows,)

    out = pl.pallas_call(
        _affine_kernel,
        out_shape=jax.ShapeDtypeStruct((rows, lanes), dtype),
        grid_spec=pltpu.PrefetchScalarGridSpec(
            num_scalar_prefetch=0,
            grid=grid,
            in_specs=[pl.BlockSpec((block_rows, lanes), lambda i: (i, 0))],
            out_specs=pl.BlockSpec((block_rows, lanes), lambda i: (i, 0)),
        ),
        compiler_params=pltpu.CompilerParams(
            dimension_semantics=("parallel",),
        ),
    )(x2)

    out_flat = out.reshape(-1)
    if padded_n != n:
        out_flat = out_flat[:n]
    return out_flat.reshape(orig_shape)


if __name__ == "__main__":
    key = jax.random.PRNGKey(0)

    # Primary test: small NCHW-style input consistent with the module.
    x = jax.random.normal(key, (2, 4, 16, 16), dtype=jnp.float32)
    y = pt_module_forward(x)
    jax.block_until_ready(y)
    y_ref = ((x + 2.0) - 1.0) * 3.0 / 2.0
    assert jnp.allclose(y, y_ref, atol=1e-5, rtol=1e-5), "mismatch vs reference (small)"

    # Secondary test: exercise the tiled lane-dense path (multi-step grid).
    x_big = jax.random.normal(jax.random.PRNGKey(1), (8, 64, 64, 64), dtype=jnp.float32)
    y_big = pt_module_forward(x_big)
    jax.block_until_ready(y_big)
    y_big_ref = ((x_big + 2.0) - 1.0) * 3.0 / 2.0
    assert jnp.allclose(y_big, y_big_ref, atol=1e-5, rtol=1e-5), "mismatch vs reference (big)"

    print("KERNEL_OK")
</pallas_src>

<mosaic_0001>
module attributes {stable_mosaic.version = 11 : i64} {
  func.func @_affine_kernel(%arg0: i32, %arg1: memref<16x128xf32, #tpu.memory_space<vmem>>, %arg2: memref<16x128xf32, #tpu.memory_space<vmem>>) attributes {dimension_semantics = [#tpu.dimension_semantics<parallel>], iteration_bounds = array<i64: 1>, scalar_prefetch = 0 : i64, scratch_operands = 0 : i64, tpu.core_type = #tpu.core_type<tc>, window_params = [{transform_indices = @transform_0, window_bounds = array<i64: 16, 128>}, {transform_indices = @transform_1, window_bounds = array<i64: 16, 128>}]} {
    %c0 = arith.constant 0 : index
    %c0_0 = arith.constant 0 : index
    %0 = vector.load %arg1[%c0, %c0_0] : memref<16x128xf32, #tpu.memory_space<vmem>>, vector<16x128xf32>
    %cst = arith.constant 1.500000e+00 : f32
    %1 = vector.broadcast %cst : f32 to vector<16x128xf32>
    %2 = arith.mulf %0, %1 : vector<16x128xf32>
    %cst_1 = arith.constant 1.500000e+00 : f32
    %3 = vector.broadcast %cst_1 : f32 to vector<16x128xf32>
    %4 = arith.addf %2, %3 : vector<16x128xf32>
    %c0_2 = arith.constant 0 : index
    %c0_3 = arith.constant 0 : index
    %5 = vector.load %arg2[%c0_2, %c0_3] : memref<16x128xf32, #tpu.memory_space<vmem>>, vector<16x128xf32>
    tpu.vector_store %arg2[%c0_2, %c0_3], %4 {strides = array<i32>} : memref<16x128xf32, #tpu.memory_space<vmem>>, vector<16x128xf32>,
    return
  }
  func.func @transform_0(%arg0: i32) -> (i32, i32) {
    %c0_i32 = arith.constant 0 : i32
    %c0_i32_0 = arith.constant 0 : i32
    return %arg0, %c0_i32 : i32, i32
  }
  func.func @transform_1(%arg0: i32) -> (i32, i32) {
    %c0_i32 = arith.constant 0 : i32
    %c0_i32_0 = arith.constant 0 : i32
    return %arg0, %c0_i32 : i32, i32
  }
}

</mosaic_0001>

<bundles_post_ra>
// kernel: tpu_custom_call.1
= control target key start
LH: loop header
LB: loop body
LE: loop exit
PB: predicated region body
PF: predicated region fallthrough
CT: control target
= control target key end

     0   :  { %6 = vsyncpa [#allocation3], 0  ;;  %s144_s0 = inlined_call_operand.hbm [shape: f32[16,128], index: 0, kind: input, shape index: {}]   ;;  %s145_s1 = inlined_call_operand.hbm [shape: f32[16,128], index: 1, kind: output, shape index: {}]  }
   0x1   :  { %7 = vsyncpa [#allocation4], 0  ;;  %s100_s6 = smov [#allocation2]   ;;  %s52_s10 = scalar_lea.hbm %s144_s0, 256 }
   0x2   :  { %s13_s7 = sshll.u32 %s100_s6, 4  ;;  %p53_p0 = scmp.ne.s32.totalorder %s144_s0, %s52_s10  ;;  %s14_s7 = int_to_ptr.vmem [resolvable:$true] %s13_s7 }
   0x3   :  { %p56_p1 = scmp.lt.u32.totalorder %s52_s10, %s144_s0 }
   0x5   :  { %p58_p2 = pnand %p56_p1, %p53_p0 }
   0x7   :  { %61 = shalt.err (!%p58_p2)
}
   0x8   :  { %s62_s15 = scalar_lea.vmem %s14_s7, 256  ;;  %p67_p4 = scmp.lt.s32.totalorder %s14_s7, %s14_s7 }
   0x9   :  { %p63_p3 = scmp.ne.s32.totalorder %s14_s7, %s62_s15  ;;  %p68_p5 = scmp.lt.s32.totalorder %s62_s15, %s62_s15 }
   0xb   :  { %p69_p6 = por %p68_p5, %p67_p4 }
   0xd   :  { %p70_p7 = pnand %p69_p6, %p63_p3 }
   0xf   :  { %73 = shalt.err (!%p70_p7)
}
  0x10   :  { %s101_s16 = smov 128   ;;  %s102_s17 = smov 8  }
  0x11   :  { %19 = dma.hbm_to_vmem [thread:$0]  %s144_s0, 256, %s14_s7, [#allocation3], %s101_s16, %s101_s16, %s102_s17  }
  0x12   :  { %96 = dma.done.wait [#allocation3], 256  }
  0x13   :  { %97 = vsyncadd [#allocation3], 4294967040  ;;  %v23_v0 = vld [vmem:[#allocation2] sm:$0xff]  ;;  %v24_v1 = vld [vmem:[#allocation2 + $0x8] sm:$0xff]  ;;  %s103_s20 = smov [#allocation5]  }
  0x14   :  { %s36_s21 = sshll.u32 %s103_s20, 4  ;;  %v25_v2 = vmul.f32 1.5, %v23_v0  ;;  %v26_v3 = vmul.f32 1.5, %v24_v1  ;;  %s37_s21 = int_to_ptr.vmem [resolvable:$true] %s36_s21 }
  0x15   :  { %s74_s22 = scalar_lea.vmem %s37_s21, 256  ;;  %p79_p9 = scmp.lt.s32.totalorder %s37_s21, %s37_s21 }
  0x16   :  { %v27_v4 = vadd.f32 1.5, %v25_v2  ;;  %v28_v5 = vadd.f32 1.5, %v26_v3  ;;  %p75_p8 = scmp.ne.s32.totalorder %s37_s21, %s74_s22  ;;  %p80_p10 = scmp.lt.s32.totalorder %s74_s22, %s74_s22 }
  0x18   :  { %29 = vst [vmem:[#allocation5] sm:$0xff] %v27_v4  ;;  %30 = vst [vmem:[#allocation5 + $0x8] sm:$0xff] %v28_v5  ;;  %p81_p11 = por %p80_p10, %p79_p9 }
  0x1a   :  { %p82_p12 = pnand %p81_p11, %p75_p8 }
  0x1c   :  { %85 = shalt.err (!%p82_p12)
}
  0x1d   :  { %s86_s24 = scalar_lea.hbm %s145_s1, 256 }
  0x1e   :  { %p87_p13 = scmp.ne.s32.totalorder %s145_s1, %s86_s24  ;;  %p90_p0 = scmp.lt.u32.totalorder %s86_s24, %s145_s1 }
  0x20   :  { %p92_p1 = pnand %p90_p0, %p87_p13 }
  0x22   :  { %95 = shalt.err (!%p92_p1)
}
  0x23   :  { %42 = dma.vmem_to_hbm [thread:$0]  %s37_s21, 256, %s145_s1, [#allocation4], %s101_s16, %s101_s16, %s102_s17  }
  0x24   :  { %98 = dma.done.wait [#allocation4], 256  }
  0x25   :  { %99 = vsyncadd [#allocation4], 4294967040 }
  0x26   :  { %46 = vsyncpa [#allocation3], 1 }
  0x27   :  { %47 = vsyncpa [#allocation4], 1 }

</bundles_post_ra>
